<compile_context>
chip_gen: v5e
topology: v5e:2x2
jax: 0.10.0
libtpu: 0.0.40
codegen_flags: <defaults>
</compile_context>

<pallas_src>
import functools

import jax
import jax.numpy as jnp
from jax import lax
from jax.experimental import pallas as pl
from jax.experimental.pallas import tpu as pltpu


_SUBLANE = 8
_LANE = 128


def _round_up(x, m):
    return ((x + m - 1) // m) * m


def _clip_concept_kernel(feats_ref, qT_ref, w_ref, b_ref, out_ref, *, tb, n):
    # feats_ref: (TB*N, D) tokens for TB images (f32 or bf16)
    x = feats_ref[...]
    xf = x.astype(jnp.float32)
    # ||x||^2 per token, accumulated in f32 (v5e VPU has no bf16 support).
    sumsq = jnp.sum(xf * xf, axis=-1, keepdims=True)           # (TB*N, 1)
    # tokens @ query^T on the MXU, f32 accumulation.
    attr = jnp.dot(x, qT_ref[...],
                   preferred_element_type=jnp.float32)         # (TB*N, A_pad)
    # L2 normalization commutes with the row-wise dot: scale after the matmul
    # (touches A_pad columns instead of D) and use rsqrt on the EUP slot.
    attr = attr * lax.rsqrt(sumsq + 1e-12)
    # adaptive_max_pool2d((1,1)) == max over all patches of each image.
    a_pad = attr.shape[-1]
    pooled = jnp.max(attr.reshape(tb, n, a_pad), axis=1)       # (TB, A_pad)
    # Final linear layer; zero-padded rows/cols of w are inert.
    out_ref[...] = (jnp.dot(pooled, w_ref[...],
                            preferred_element_type=jnp.float32)
                    + b_ref[...])                              # (TB, C_pad)


def _choose_tb(B, N, D, itemsize):
    """Batch-block size: multiple of 8, double-buffered token block <= ~8 MiB
    (safe for v7x's 64 MiB VMEM / 32 MiB default scoped limit), and >= 2 grid
    steps whenever the batch allows so the parallel grid axis can split
    across v7x's two TensorCores."""
    budget = 8 * 1024 * 1024
    per_image = max(1, N * D * itemsize)
    tb = max(_SUBLANE, (budget // (2 * per_image)) // _SUBLANE * _SUBLANE)
    b_ceil = _round_up(B, _SUBLANE)
    tb = min(tb, b_ceil)
    if b_ceil >= 2 * _SUBLANE:
        tb = min(tb, max(_SUBLANE, (b_ceil // 2) // _SUBLANE * _SUBLANE))
    return tb


@functools.partial(jax.jit, static_argnames=("mxu_dtype",))
def clip_concept_forward(image_features, query_features, lin_w, lin_b,
                         *, mxu_dtype=jnp.float32):
    """image_features: (B, N, D) patch tokens (CLS already dropped — dropping
    before or after per-token normalization is equivalent).
    query_features: (A, D); lin_w: (C, A); lin_b: (C,).
    mxu_dtype: dtype of the token/query operands fed to the MXU
    (jnp.bfloat16 recommended on v6e/v7x; accumulation stays f32)."""
    B, N, D = image_features.shape
    A = query_features.shape[0]
    C = lin_w.shape[0]

    itemsize = jnp.dtype(mxu_dtype).itemsize
    a_pad = _round_up(A, _LANE)
    c_pad = _round_up(C, _LANE)
    tb = _choose_tb(B, N, D, itemsize)
    b_pad = _round_up(B, tb)
    grid = b_pad // tb

    # Pad + lay out operands: tokens flattened to (B_pad*N, D) so each grid
    # step is one big row-major MXU dot; queries pre-transposed to (D, A_pad)
    # and the linear weight to (A_pad, C_pad); zero padding is inert.
    feats = image_features.astype(mxu_dtype)
    if b_pad != B:
        feats = jnp.pad(feats, ((0, b_pad - B), (0, 0), (0, 0)))
    feats = feats.reshape(b_pad * N, D)

    qT = jnp.zeros((D, a_pad), mxu_dtype)
    qT = qT.at[:, :A].set(query_features.T.astype(mxu_dtype))
    wT = jnp.zeros((a_pad, c_pad), jnp.float32)
    wT = wT.at[:A, :C].set(lin_w.T.astype(jnp.float32))
    b2 = jnp.zeros((1, c_pad), jnp.float32)
    b2 = b2.at[0, :C].set(lin_b.astype(jnp.float32))

    cost = pl.CostEstimate(
        flops=(2 * b_pad * N * D * a_pad + 2 * b_pad * a_pad * c_pad
               + 2 * b_pad * N * D),
        transcendentals=b_pad * N,
        bytes_accessed=(b_pad * N * D * itemsize + D * a_pad * itemsize
                        + a_pad * c_pad * 4 + c_pad * 4 + b_pad * c_pad * 4),
    )

    kernel = functools.partial(_clip_concept_kernel, tb=tb, n=N)
    out = pl.pallas_call(
        kernel,
        out_shape=jax.ShapeDtypeStruct((b_pad, c_pad), jnp.float32),
        grid_spec=pltpu.PrefetchScalarGridSpec(
            num_scalar_prefetch=0,
            grid=(grid,),
            in_specs=[
                pl.BlockSpec((tb * N, D), lambda b: (b, 0)),
                pl.BlockSpec((D, a_pad), lambda b: (0, 0)),
                pl.BlockSpec((a_pad, c_pad), lambda b: (0, 0)),
                pl.BlockSpec((1, c_pad), lambda b: (0, 0)),
            ],
            out_specs=pl.BlockSpec((tb, c_pad), lambda b: (b, 0)),
        ),
        compiler_params=pltpu.CompilerParams(
            dimension_semantics=("parallel",)),
        cost_estimate=cost,
    )(feats, qT, wT, b2)

    return out[:B, :C]


def surrogate_encode_image(images, patch_proj, cls_token, patch_size):
    """Deterministic stand-in for clip.encode_image(..., return_all=True).

    images: (B, 3, H, W) NCHW.  Returns (B, 1 + N, D) token features
    (CLS token first), computed by a stride-`patch_size` patch embedding."""
    B, Cin, H, W = images.shape
    P = patch_size
    h, w = H // P, W // P
    x = images.reshape(B, Cin, h, P, w, P)
    x = jnp.transpose(x, (0, 2, 4, 1, 3, 5)).reshape(B, h * w, Cin * P * P)
    tokens = x @ patch_proj                                    # (B, N, D)
    cls = jnp.broadcast_to(cls_token[None, None, :],
                           (B, 1, patch_proj.shape[1]))
    return jnp.concatenate([cls, tokens], axis=1)              # (B, 1+N, D)


def reference_forward(image_features, query_features, lin_w, lin_b):
    """Pure-JAX reference mirroring the PyTorch forward (post-encoder)."""
    xn = image_features / jnp.linalg.norm(image_features, axis=-1,
                                          keepdims=True)
    attr = xn @ query_features.T                               # (B, N, A)
    pooled = jnp.max(attr, axis=1)                             # (B, A)
    return pooled @ lin_w.T + lin_b


if __name__ == "__main__":
    B = 2              # batch
    IMG = 64           # image spatial size
    PATCH = 16         # CLIP ViT-B/16 patch size -> w = h = 4, N = 16 patches
    D = 32             # feature (embedding) dim
    A = 8              # number of query words / attributes
    NUM_CLASSES = 16   # num_classes

    key = jax.random.PRNGKey(0)
    k_img, k_proj, k_cls, k_q, k_w, k_b = jax.random.split(key, 6)

    images = jax.random.normal(k_img, (B, 3, IMG, IMG), dtype=jnp.float32)
    patch_proj = jax.random.normal(k_proj, (3 * PATCH * PATCH, D),
                                   dtype=jnp.float32) * 0.02
    cls_token = jax.random.normal(k_cls, (D,), dtype=jnp.float32) * 0.02

    # query_features buffer: (A, D), unit-normalized like the real module
    qf = jax.random.normal(k_q, (A, D), dtype=jnp.float32)
    query_features = qf / jnp.linalg.norm(qf, axis=-1, keepdims=True)

    # nn.Linear(A, NUM_CLASSES)
    lin_w = jax.random.normal(k_w, (NUM_CLASSES, A), dtype=jnp.float32) * 0.1
    lin_b = jax.random.normal(k_b, (NUM_CLASSES,), dtype=jnp.float32) * 0.1

    # --- glue: surrogate CLIP image encoder, drop CLS token ---------------
    all_tokens = surrogate_encode_image(images, patch_proj, cls_token, PATCH)
    image_features = all_tokens[:, 1:]                         # (B, N, D)

    ref = reference_forward(image_features, query_features, lin_w, lin_b)

    # --- Pallas kernel: f32 MXU operands (exact parity) -------------------
    logits = clip_concept_forward(image_features, query_features,
                                  lin_w, lin_b, mxu_dtype=jnp.float32)
    logits = jax.block_until_ready(logits)
    assert logits.shape == (B, NUM_CLASSES)
    assert jnp.allclose(logits, ref, atol=1e-4, rtol=1e-4)

    # --- Pallas kernel: bf16 MXU operands (v6e/v7x fast path) -------------
    logits_bf16 = clip_concept_forward(image_features, query_features,
                                       lin_w, lin_b, mxu_dtype=jnp.bfloat16)
    logits_bf16 = jax.block_until_ready(logits_bf16)
    assert logits_bf16.shape == (B, NUM_CLASSES)
    assert jnp.allclose(logits_bf16, ref, atol=1e-1, rtol=1e-1)

    print("KERNEL_OK")
</pallas_src>

<mosaic_0001>
module attributes {stable_mosaic.version = 11 : i64} {
  func.func @_clip_concept_kernel(%arg0: i32, %arg1: memref<128x32xf32, #tpu.memory_space<vmem>>, %arg2: memref<32x128xf32, #tpu.memory_space<vmem>>, %arg3: memref<128x128xf32, #tpu.memory_space<vmem>>, %arg4: memref<1x128xf32, #tpu.memory_space<vmem>>, %arg5: memref<8x128xf32, #tpu.memory_space<vmem>>) attributes {dimension_semantics = [#tpu.dimension_semantics<parallel>], iteration_bounds = array<i64: 1>, scalar_prefetch = 0 : i64, scratch_operands = 0 : i64, tpu.core_type = #tpu.core_type<tc>, window_params = [{transform_indices = @transform_0, window_bounds = array<i64: 128, 32>}, {pipeline_mode = #tpu.pipeline_mode<synchronous>, transform_indices = @transform_1, window_bounds = array<i64: 32, 128>}, {pipeline_mode = #tpu.pipeline_mode<synchronous>, transform_indices = @transform_2, window_bounds = array<i64: 128, 128>}, {pipeline_mode = #tpu.pipeline_mode<synchronous>, transform_indices = @transform_3, window_bounds = array<i64: 1, 128>}, {transform_indices = @transform_4, window_bounds = array<i64: 8, 128>}]} {
    %c0 = arith.constant 0 : index
    %c0_0 = arith.constant 0 : index
    %0 = vector.load %arg1[%c0, %c0_0] : memref<128x32xf32, #tpu.memory_space<vmem>>, vector<128x32xf32>
    %1 = arith.mulf %0, %0 : vector<128x32xf32>
    %cst = arith.constant dense<0.000000e+00> : vector<128xf32>
    %2 = vector.multi_reduction <add>, %1, %cst [1] : vector<128x32xf32> to vector<128xf32>
    %3 = vector.shape_cast %2 : vector<128xf32> to vector<128x1xf32>
    %c0_1 = arith.constant 0 : index
    %c0_2 = arith.constant 0 : index
    %4 = vector.load %arg2[%c0_1, %c0_2] : memref<32x128xf32, #tpu.memory_space<vmem>>, vector<32x128xf32>
    %cst_3 = arith.constant dense<0.000000e+00> : vector<128x128xf32>
    %5 = tpu.matmul %0, %4, %cst_3 {dimension_numbers = #tpu.dot_dimension_numbers<[1], [0], [0], [1], [0, 0, 1, 1], [], []>} : vector<128x32xf32>, vector<32x128xf32>, vector<128x128xf32> -> vector<128x128xf32>
    %cst_4 = arith.constant 9.99999996E-13 : f32
    %6 = vector.broadcast %cst_4 : f32 to vector<128x1xf32>
    %7 = arith.addf %3, %6 : vector<128x1xf32>
    %8 = math.rsqrt %7 : vector<128x1xf32>
    %9 = vector.broadcast %8 : vector<128x1xf32> to vector<128x128xf32>
    %10 = arith.mulf %5, %9 : vector<128x128xf32>
    %11 = vector.shape_cast %10 : vector<128x128xf32> to vector<8x16x128xf32>
    %cst_5 = arith.constant dense<0xFF800000> : vector<8x128xf32>
    %12 = vector.multi_reduction <maximumf>, %11, %cst_5 [1] : vector<8x16x128xf32> to vector<8x128xf32>
    %c0_6 = arith.constant 0 : index
    %c0_7 = arith.constant 0 : index
    %13 = vector.load %arg3[%c0_6, %c0_7] : memref<128x128xf32, #tpu.memory_space<vmem>>, vector<128x128xf32>
    %cst_8 = arith.constant dense<0.000000e+00> : vector<8x128xf32>
    %14 = tpu.matmul %12, %13, %cst_8 {dimension_numbers = #tpu.dot_dimension_numbers<[1], [0], [0], [1], [0, 0, 1, 1], [], []>} : vector<8x128xf32>, vector<128x128xf32>, vector<8x128xf32> -> vector<8x128xf32>
    %c0_9 = arith.constant 0 : index
    %c0_10 = arith.constant 0 : index
    %15 = vector.load %arg4[%c0_9, %c0_10] : memref<1x128xf32, #tpu.memory_space<vmem>>, vector<1x128xf32>
    %16 = vector.broadcast %15 : vector<1x128xf32> to vector<8x128xf32>
    %17 = arith.addf %14, %16 : vector<8x128xf32>
    %c0_11 = arith.constant 0 : index
    %c0_12 = arith.constant 0 : index
    %18 = vector.load %arg5[%c0_11, %c0_12] : memref<8x128xf32, #tpu.memory_space<vmem>>, vector<8x128xf32>
    tpu.vector_store %arg5[%c0_11, %c0_12], %17 {strides = array<i32>} : memref<8x128xf32, #tpu.memory_space<vmem>>, vector<8x128xf32>,
    return
  }
  func.func @transform_0(%arg0: i32) -> (i32, i32) {
    %c0_i32 = arith.constant 0 : i32
    %c0_i32_0 = arith.constant 0 : i32
    return %arg0, %c0_i32 : i32, i32
  }
  func.func @transform_1(%arg0: i32) -> (i32, i32) {
    %c0_i32 = arith.constant 0 : i32
    %c0_i32_0 = arith.constant 0 : i32
    %c0_i32_1 = arith.constant 0 : i32
    return %c0_i32, %c0_i32_0 : i32, i32
  }
  func.func @transform_2(%arg0: i32) -> (i32, i32) {
    %c0_i32 = arith.constant 0 : i32
    %c0_i32_0 = arith.constant 0 : i32
    %c0_i32_1 = arith.constant 0 : i32
    return %c0_i32, %c0_i32_0 : i32, i32
  }
  func.func @transform_3(%arg0: i32) -> (i32, i32) {
    %c0_i32 = arith.constant 0 : i32
    %c0_i32_0 = arith.constant 0 : i32
    %c0_i32_1 = arith.constant 0 : i32
    return %c0_i32, %c0_i32_0 : i32, i32
  }
  func.func @transform_4(%arg0: i32) -> (i32, i32) {
    %c0_i32 = arith.constant 0 : i32
    %c0_i32_0 = arith.constant 0 : i32
    return %arg0, %c0_i32 : i32, i32
  }
}

</mosaic_0001>

<bundles_post_ra>
// kernel: clip_concept_forward.1
= control target key start
LH: loop header
LB: loop body
LE: loop exit
PB: predicated region body
PF: predicated region fallthrough
CT: control target
= control target key end

     0   :  { %vm49_vm0 = vcmask 261120   ;;  %s1118_s1 = inlined_call_operand.vmem [shape: f32[32,128], index: 1, kind: input, shape index: {}]   ;;  %s1119_s0 = inlined_call_operand.vmem [shape: f32[128,32], index: 0, kind: input, shape index: {}]   ;;  %s1120_s3 = inlined_call_operand.vmem [shape: f32[1,128], index: 3, kind: input, shape index: {}]   ;;  %s1121_s2 = inlined_call_operand.vmem [shape: f32[128,128], index: 2, kind: input, shape index: {}]   ;;  %s1122_s4 = inlined_call_operand.vmem [shape: f32[8,128], index: 4, kind: output, shape index: {}]  }
   0x1   :  { %v101_v0 = vld [vmem:[%s1118_s1 + $0x18] sm:$0xff]  ;;  %v100_v1 = vld [vmem:[%s1118_s1 + $0x10] sm:$0xff]  ;;  %v622_v2 = vld [vmem:[%s1119_s0 + $0x20] sm:$0xff] }
   0x2   :  { %162 = vmatpush.msra.mxu0 %v101_v0  ;;  %547 = vmatpush.msra.mxu2 %v101_v0  ;;  %v37_v3 = vmul.f32 %v622_v2, %v622_v2  ;;  %v19_v4 = vld [vmem:[%s1119_s0 + $0x10] sm:$0xff]  ;;  %v17_v5 = vld [vmem:[%s1119_s0] sm:$0xff]  ;;  %v22_v8 = vld [vmem:[%s1119_s0 + $0x28] sm:$0xff] }
   0x3   :  { %548 = vmatpush.msra.mxu3 %v101_v0  ;;  %v35_v6 = vmul.f32 %v19_v4, %v19_v4  ;;  %v33_v7 = vmul.f32 %v17_v5, %v17_v5  ;;  %v99_v10 = vld [vmem:[%s1118_s1 + $0x8] sm:$0xff]  ;;  %v642_v11 = vld [vmem:[%s1119_s0 + $0x18] sm:$0xff]  ;;  %v98_v15 = vld [vmem:[%s1118_s1] sm:$0xff]  ;;  %v38_v16 = vmul.f32 %v22_v8, %v22_v8 }
   0x4   :  { %163 = vmatpush.msra.mxu0 %v100_v1  ;;  %549 = vmatpush.msra.mxu2 %v100_v1  ;;  %v62_v9 = vsel %vm49_vm0, %v37_v3, 0.0  ;;  %v18_v12 = vld [vmem:[%s1119_s0 + $0x8] sm:$0xff]  ;;  %v36_v17 = vmul.f32 %v642_v11, %v642_v11  ;;  %v27_v19 = vld [vmem:[%s1119_s0 + $0x50] sm:$0xff]  ;;  %v25_v23 = vld [vmem:[%s1119_s0 + $0x40] sm:$0xff] }
   0x5   :  { %550 = vmatpush.msra.mxu3 %v100_v1  ;;  %63 = vadd.xlane.f32.xlu2 %v62_v9  ;;  %v56_v13 = vsel %vm49_vm0, %v35_v6, 0.0  ;;  %v50_v14 = vsel %vm49_vm0, %v33_v7, 0.0  ;;  %v34_v18 = vmul.f32 %v18_v12, %v18_v12  ;;  %v65_v20 = vsel %vm49_vm0, %v38_v16, 0.0  ;;  %v23_v24 = vld [vmem:[%s1119_s0 + $0x30] sm:$0xff]  ;;  %v24_v25 = vld [vmem:[%s1119_s0 + $0x38] sm:$0xff]  ;;  %v26_v33 = vld [vmem:[%s1119_s0 + $0x48] sm:$0xff] }
   0x6   :  { %57 = vadd.xlane.f32.xlu1 %v56_v13  ;;  %51 = vadd.xlane.f32.xlu0 %v50_v14  ;;  %v59_v21 = vsel %vm49_vm0, %v36_v17, 0.0  ;;  %v41_v26 = vmul.f32 %v25_v23, %v25_v23  ;;  %v40_v27 = vmul.f32 %v24_v25, %v24_v25  ;;  %v39_v28 = vmul.f32 %v23_v24, %v23_v24  ;;  %v28_v29 = vld [vmem:[%s1119_s0 + $0x58] sm:$0xff]  ;;  %v29_v37 = vld [vmem:[%s1119_s0 + $0x60] sm:$0xff]  ;;  %v31_v41 = vld [vmem:[%s1119_s0 + $0x70] sm:$0xff] }
   0x7   :  { %164 = vmatpush.msra.mxu0 %v99_v10  ;;  %551 = vmatpush.msra.mxu2 %v99_v10  ;;  %v53_v22 = vsel %vm49_vm0, %v34_v18, 0.0  ;;  %v44_v34 = vmul.f32 %v28_v29, %v28_v29  ;;  %v43_v35 = vmul.f32 %v27_v19, %v27_v19  ;;  %v42_v36 = vmul.f32 %v26_v33, %v26_v33  ;;  %v30_v42 = vld [vmem:[%s1119_s0 + $0x68] sm:$0xff]  ;;  %v32_v49 = vld [vmem:[%s1119_s0 + $0x78] sm:$0xff] }
   0x8   :  { %552 = vmatpush.msra.mxu3 %v99_v10  ;;  %v74_v30 = vsel %vm49_vm0, %v41_v26, 0.0  ;;  %v71_v31 = vsel %vm49_vm0, %v40_v27, 0.0  ;;  %v68_v32 = vsel %vm49_vm0, %v39_v28, 0.0  ;;  %v47_v43 = vmul.f32 %v31_v41, %v31_v41 }
   0x9   :  { %165 = vmatpush.msra.mxu0 %v98_v15  ;;  %553 = vmatpush.msra.mxu2 %v98_v15  ;;  %v83_v38 = vsel %vm49_vm0, %v44_v34, 0.0  ;;  %v80_v39 = vsel %vm49_vm0, %v43_v35, 0.0  ;;  %v77_v40 = vsel %vm49_vm0, %v42_v36, 0.0  ;;  %v46_v44 = vmul.f32 %v30_v42, %v30_v42 }
   0xa   :  { %554 = vmatpush.msra.mxu3 %v98_v15  ;;  %531 = vmatmul.msk.f32.vlgmr.msra.gmra.mxu0 %vm49_vm0, %v17_v5  ;;  %v45_v45 = vmul.f32 %v29_v37, %v29_v37  ;;  %v92_v46 = vsel %vm49_vm0, %v47_v43, 0.0  ;;  %v48_v50 = vmul.f32 %v32_v49, %v32_v49 }
   0xb   :  { %536 = vmatmul.msk.f32.vlgmr.msra.gmra.mxu2 %vm49_vm0, %v22_v8  ;;  %541 = vmatmul.msk.f32.vlgmr.msra.gmra.mxu3 %vm49_vm0, %v27_v19  ;;  %v89_v47 = vsel %vm49_vm0, %v46_v44, 0.0 }
   0xc   :  { %v86_v48 = vsel %vm49_vm0, %v45_v45, 0.0  ;;  %v95_v51 = vsel %vm49_vm0, %v48_v50, 0.0 }
   0xd   :  { %66 = vadd.xlane.f32.xlu2 %v65_v20 }
   0xe   :  { %60 = vadd.xlane.f32.xlu1 %v59_v21  ;;  %54 = vadd.xlane.f32.xlu0 %v53_v22 }
  0x12   :  { %532 = vmatmul.msk.f32.gmra.mxu0 %vm49_vm0, %v18_v12 }
  0x13   :  { %537 = vmatmul.msk.f32.gmra.mxu2 %vm49_vm0, %v23_v24  ;;  %542 = vmatmul.msk.f32.gmra.mxu3 %vm49_vm0, %v28_v29 }
  0x15   :  { %75 = vadd.xlane.f32.xlu2 %v74_v30 }
  0x16   :  { %72 = vadd.xlane.f32.xlu1 %v71_v31  ;;  %69 = vadd.xlane.f32.xlu0 %v68_v32 }
  0x1a   :  { %533 = vmatmul.msk.f32.gmra.mxu0 %vm49_vm0, %v19_v4 }
  0x1b   :  { %538 = vmatmul.msk.f32.gmra.mxu2 %vm49_vm0, %v24_v25  ;;  %543 = vmatmul.msk.f32.gmra.mxu3 %vm49_vm0, %v29_v37 }
  0x1d   :  { %84 = vadd.xlane.f32.xlu2 %v83_v38 }
  0x1e   :  { %81 = vadd.xlane.f32.xlu1 %v80_v39  ;;  %78 = vadd.xlane.f32.xlu0 %v77_v40 }
  0x22   :  { %534 = vmatmul.msk.f32.gmra.mxu0 %vm49_vm0, %v642_v11 }
  0x23   :  { %539 = vmatmul.msk.f32.gmra.mxu2 %vm49_vm0, %v25_v23  ;;  %544 = vmatmul.msk.f32.gmra.mxu3 %vm49_vm0, %v30_v42 }
  0x25   :  { %93 = vadd.xlane.f32.xlu2 %v92_v46 }
  0x26   :  { %90 = vadd.xlane.f32.xlu1 %v89_v47  ;;  %87 = vadd.xlane.f32.xlu0 %v86_v48 }
  0x2a   :  { %535 = vmatmul.msk.f32.gmra.mxu0 %vm49_vm0, %v622_v2 }
  0x2b   :  { %540 = vmatmul.msk.f32.gmra.mxu2 %vm49_vm0, %v26_v33  ;;  %545 = vmatmul.msk.f32.gmra.mxu3 %vm49_vm0, %v31_v41 }
  0x2e   :  { %96 = vadd.xlane.f32.xlu0 %v95_v51 }
  0x33   :  { %546 = vmatmul.msk.f32.gmra.mxu3 %vm49_vm0, %v32_v49 }
  0x78   :  { %v64_v52 = vpop.xlane.xlu2 %63 }
  0x79   :  { %v58_v53 = vpop.xlane.xlu1 %57  ;;  %v52_v54 = vpop.xlane.xlu0 %51  ;;  %v719_v57 = vadd.f32 1e-12, %v64_v52 }
  0x7a   :  { %v715_v55 = vadd.f32 1e-12, %v58_v53  ;;  %v717_v56 = vadd.f32 1e-12, %v52_v54 }
  0x7c   :  { %556 = vrsqrt.f32 %v715_v55  ;;  %vm237_vm1 = vweird.f32 %v717_v56  ;;  %vm257_vm3 = vweird.f32 %v715_v55 }
  0x7d   :  { %558 = vrsqrt.f32 %v717_v56 }
  0x7e   :  { %560 = vrsqrt.f32 %v719_v57 }
  0x80   :  { %v67_v58 = vpop.xlane.xlu2 %66 }
  0x81   :  { %v724_v59 = vadd.f32 1e-12, %v67_v58  ;;  %v61_v60 = vpop.xlane.xlu1 %60  ;;  %v55_v61 = vpop.xlane.xlu0 %54 }
  0x82   :  { %v726_v62 = vpop.eup %556  ;;  %v728_v63 = vadd.f32 1e-12, %v61_v60  ;;  %v730_v0 = vadd.f32 1e-12, %v55_v61 }
  0x83   :  { %v732_v1 = vpop.eup %558  ;;  %v252_v2 = vmul.f32 %v726_v62, %v715_v55  ;;  %562 = vrsqrt.f32 %v724_v59  ;;  %vm258_vm5 = vweird.f32 %v726_v62  ;;  %vm287_vm10 = vweird.f32 %v724_v59 }
  0x84   :  { %v232_v3 = vmul.f32 %v732_v1, %v717_v56  ;;  %564 = vrsqrt.f32 %v728_v63  ;;  %v741_v4 = vpop.eup %560  ;;  %vm238_vm2 = vweird.f32 %v732_v1  ;;  %vm247_vm4 = vweird.f32 %v730_v0  ;;  %vm830_vm9 = vmor %vm257_vm3, %vm258_vm5 }
  0x85   :  { %566 = vrsqrt.f32 %v730_v0  ;;  %v253_v6 = vmul.f32 %v726_v62, %v252_v2  ;;  %v272_v11 = vmul.f32 %v741_v4, %v719_v57  ;;  %vm796_vm6 = vmor %vm237_vm1, %vm238_vm2  ;;  %vm267_vm7 = vweird.f32 %v728_v63 }
  0x86   :  { %v233_v5 = vmul.f32 %v732_v1, %v232_v3  ;;  %vm277_vm5 = vweird.f32 %v719_v57 }
  0x87   :  { %v745_v7 = vpop.f32.mrf.mxu0  ;;  %v254_v19 = vmul.f32 0.5, %v253_v6  ;;  %v273_v24 = vmul.f32 %v741_v4, %v272_v11 }
  0x88   :  { %v234_v8 = vmul.f32 0.5, %v233_v5  ;;  %v76_v9 = vpop.xlane.xlu2 %75 }
  0x89   :  { %v747_v10 = vpop.eup %562  ;;  %v73_v12 = vpop.xlane.xlu1 %72  ;;  %v761_v20 = vadd.f32 1e-12, %v76_v9  ;;  %v255_v30 = vsub.f32 1.5, %v254_v19  ;;  %v274_v35 = vmul.f32 0.5, %v273_v24 }
  0x8a   :  { %v70_v13 = vpop.xlane.xlu0 %69  ;;  %v751_v14 = vpop.eup %564  ;;  %v282_v15 = vmul.f32 %v747_v10, %v724_v59  ;;  %v755_v16 = vadd.f32 1e-12, %v73_v12  ;;  %v235_v23 = vsub.f32 1.5, %v234_v8  ;;  %vm288_vm11 = vweird.f32 %v747_v10 }
  0x8b   :  { %v757_v17 = vadd.f32 1e-12, %v70_v13  ;;  %v759_v18 = vpop.eup %566  ;;  %v262_v21 = vmul.f32 %v751_v14, %v728_v63  ;;  %v806_v47 = vmul.f32 %v726_v62, %v255_v30  ;;  %v275_v54 = vsub.f32 1.5, %v274_v35  ;;  %v478_v35 = vld [vmem:[%s1121_s2 + $0x78] sm:$0xff] }
  0x8c   :  { %v242_v22 = vmul.f32 %v759_v18, %v730_v0  ;;  %568 = vrsqrt.f32 %v755_v16  ;;  %v283_v25 = vmul.f32 %v747_v10, %v282_v15  ;;  %v236_v33 = vmul.f32 %v732_v1, %v235_v23  ;;  %506 = vmatpush.msra.mxu1 %v478_v35 }
  0x8d   :  { %570 = vrsqrt.f32 %v757_v17  ;;  %v263_v31 = vmul.f32 %v751_v14, %v262_v21  ;;  %vm248_vm8 = vweird.f32 %v759_v18  ;;  %vm297_vm12 = vweird.f32 %v757_v17 }
  0x8e   :  { %v243_v26 = vmul.f32 %v759_v18, %v242_v22  ;;  %v772_v27 = vpop.f32.mrf.mxu2  ;;  %v774_v28 = vpop.f32.mrf.mxu3  ;;  %572 = vrsqrt.f32 %v761_v20  ;;  %v284_v36 = vmul.f32 0.5, %v283_v25  ;;  %v240_v49 = vsel %vm796_vm6, %v732_v1, %v236_v33  ;;  %vm856_vm14 = vmor %vm247_vm4, %vm248_vm8 }
  0x8f   :  { %v778_v29 = vpop.f32.mrf.mxu0  ;;  %v264_v48 = vmul.f32 0.5, %v263_v31  ;;  %v835_v2 = vmul.f32 %v240_v49, %v745_v7  ;;  %v260_v55 = vsel %vm830_vm9, %v726_v62, %v806_v47  ;;  %vm307_vm13 = vweird.f32 %v755_v16 }
  0x90   :  { %v244_v32 = vmul.f32 0.5, %v243_v26  ;;  %v85_v34 = vpop.xlane.xlu2 %84  ;;  %v285_v53 = vsub.f32 1.5, %v284_v36  ;;  %vm268_vm15 = vweird.f32 %v751_v14  ;;  %v864_v21 = vmul.f32 %v741_v4, %v275_v54  ;;  %v477_v36 = vld [vmem:[%s1121_s2 + $0x70] sm:$0xff] }
  0x91   :  { %v783_v37 = vadd.f32 1e-12, %v85_v34  ;;  %v82_v38 = vpop.xlane.xlu1 %81  ;;  %v265_v7 = vsub.f32 1.5, %v264_v48  ;;  %vm269_vm4 = vmor %vm267_vm7, %vm268_vm15  ;;  %vm278_vm6 = vweird.f32 %v741_v4  ;;  %507 = vmatpush.msra.mxu1 %v477_v36 }
  0x92   :  { %v79_v39 = vpop.xlane.xlu0 %78  ;;  %v786_v40 = vpop.eup %568  ;;  %v245_v41 = vsub.f32 1.5, %v244_v32  ;;  %v789_v42 = vadd.f32 1e-12, %v82_v38  ;;  %v850_v12 = vmul.f32 %v747_v10, %v285_v53 }
  0x93   :  { %v792_v43 = vpop.eup %570  ;;  %v302_v45 = vmul.f32 %v786_v40, %v755_v16  ;;  %574 = vrsqrt.f32 %v783_v37  ;;  %v803_v46 = vadd.f32 1e-12, %v79_v39  ;;  %vm347_vm0 = vweird.f32 %v783_v37 }
  0x94   :  { %v292_v50 = vmul.f32 %v792_v43, %v757_v17  ;;  %v814_v51 = vpop.eup %572  ;;  %576 = vrsqrt.f32 %v789_v42  ;;  %v246_v58 = vmul.f32 %v759_v18, %v245_v41  ;;  %v266_v34 = vmul.f32 %v751_v14, %v265_v7 }
  0x95   :  { %v303_v52 = vmul.f32 %v786_v40, %v302_v45  ;;  %578 = vrsqrt.f32 %v803_v46  ;;  %v312_v6 = vmul.f32 %v814_v51, %v761_v20  ;;  %vm298_vm1 = vweird.f32 %v792_v43 }
  0x96   :  { %v293_v56 = vmul.f32 %v792_v43, %v292_v50  ;;  %v822_v60 = vpop.f32.mrf.mxu2  ;;  %v824_v61 = vpop.f32.mrf.mxu3  ;;  %v250_v22 = vsel %vm856_vm14, %v759_v18, %v246_v58  ;;  %vm308_vm2 = vweird.f32 %v786_v40  ;;  %vm337_vm3 = vweird.f32 %v789_v42  ;;  %vm918_vm8 = vmor %vm297_vm12, %vm298_vm1 }
  0x97   :  { %v304_v3 = vmul.f32 0.5, %v303_v52  ;;  %v173_v5 = vpop.f32.mrf.mxu0  ;;  %v313_v32 = vmul.f32 %v814_v51, %v312_v6  ;;  %v392_v38 = vmul.f32 %v250_v22, %v778_v29  ;;  %v476_v29 = vld [vmem:[%s1121_s2 + $0x68] sm:$0xff]  ;;  %v270_v63 = vsel %vm269_vm4, %v751_v14, %v266_v34  ;;  %vm935_vm12 = vmor %vm307_vm13, %vm308_vm2 }
  0x98   :  { %v294_v8 = vmul.f32 0.5, %v293_v56  ;;  %v94_v9 = vpop.xlane.xlu2 %93  ;;  %v393_v49 = vmul.f32 %v260_v55, %v173_v5  ;;  %508 = vmatpush.msra.mxu1 %v476_v29  ;;  %vm943_vm14 = vmor %vm287_vm10, %vm288_vm11  ;;  %vm317_vm13 = vweird.f32 %v761_v20  ;;  %vm318_vm4 = vweird.f32 %v814_v51  ;;  %v467_v20 = vld [vmem:[%s1121_s2 + $0x20] sm:$0xff] }
  0x99   :  { %v847_v11 = vpop.eup %574  ;;  %v860_v62 = vadd.f32 1e-12, %v94_v9  ;;  %v91_v15 = vpop.xlane.xlu1 %90  ;;  %v305_v30 = vsub.f32 1.5, %v304_v3  ;;  %v407_v1 = vmax.f32 %v835_v2, %v392_v38  ;;  %v314_v9 = vmul.f32 0.5, %v313_v32  ;;  %vm279_vm2 = vmor %vm277_vm5, %vm278_vm6 }
  0x9a   :  { %v88_v19 = vpop.xlane.xlu0 %87  ;;  %v342_v0 = vmul.f32 %v847_v11, %v783_v37  ;;  %v295_v23 = vsub.f32 1.5, %v294_v8  ;;  %v871_v24 = vadd.f32 1e-12, %v91_v15  ;;  %v873_v25 = vpop.eup %576  ;;  %vm348_vm9 = vweird.f32 %v847_v11 }
  0x9b   :  { %580 = vrsqrt.f32 %v860_v62  ;;  %v877_v26 = vadd.f32 1e-12, %v88_v19  ;;  %v879_v31 = vpop.eup %578  ;;  %v332_v33 = vmul.f32 %v873_v25, %v789_v42  ;;  %v306_v50 = vmul.f32 %v786_v40, %v305_v30  ;;  %vm964_vm10 = vmor %vm347_vm0, %vm348_vm9  ;;  %v474_v19 = vld [vmem:[%s1121_s2 + $0x58] sm:$0xff] }
  0x9c   :  { %v343_v18 = vmul.f32 %v847_v11, %v342_v0  ;;  %v296_v39 = vmul.f32 %v792_v43, %v295_v23  ;;  %582 = vrsqrt.f32 %v871_v24  ;;  %v322_v48 = vmul.f32 %v879_v31, %v803_v46  ;;  %vm1063_vm9 = vmor %vm317_vm13, %vm318_vm4 }
  0x9d   :  { %v333_v44 = vmul.f32 %v873_v25, %v332_v33  ;;  %584 = vrsqrt.f32 %v877_v26  ;;  %vm338_vm7 = vweird.f32 %v873_v25  ;;  %v310_v6 = vsel %vm935_vm12, %v786_v40, %v306_v50  ;;  %v475_v40 = vld [vmem:[%s1121_s2 + $0x60] sm:$0xff] }
  0x9e   :  { %v344_v41 = vmul.f32 0.5, %v343_v18  ;;  %v188_v45 = vpop.f32.mrf.mxu2  ;;  %v899_v47 = vpop.f32.mrf.mxu3  ;;  %v300_v3 = vsel %vm918_vm8, %v792_v43, %v296_v39  ;;  %v290_v59 = vsel %vm943_vm14, %v747_v10, %v850_v12  ;;  %v323_v7 = vmul.f32 %v879_v31, %v322_v48  ;;  %509 = vmatpush.msra.mxu1 %v475_v40  ;;  %vm339_vm11 = vmor %vm337_vm3, %vm338_vm7  ;;  %v471_v50 = vld [vmem:[%s1121_s2 + $0x40] sm:$0xff] }
  0x9f   :  { %v176_v52 = vpop.f32.mrf.mxu0  ;;  %v334_v53 = vmul.f32 0.5, %v333_v44  ;;  %v408_v23 = vrot.slane %v407_v1, 4  ;;  %v397_v30 = vmul.f32 %v300_v3, %v822_v60  ;;  %v398_v18 = vmul.f32 %v310_v6, %v188_v45  ;;  %v472_v44 = vld [vmem:[%s1121_s2 + $0x48] sm:$0xff]  ;;  %v470_v3 = vld [vmem:[%s1121_s2 + $0x38] sm:$0xff] }
  0xa0   :  { %v345_v56 = vsub.f32 1.5, %v344_v41  ;;  %v394_v5 = vmul.f32 %v270_v63, %v176_v52  ;;  %v396_v33 = vmul.f32 %v290_v59, %v772_v27  ;;  %510 = vmatpush.msra.mxu1 %v474_v19  ;;  %v324_v27 = vmul.f32 0.5, %v323_v7 }
  0xa1   :  { %v924_v58 = vpop.eup %580  ;;  %v335_v43 = vsub.f32 1.5, %v334_v53  ;;  %v315_v29 = vsub.f32 1.5, %v314_v9  ;;  %v1008_v48 = vmax.f32 %v407_v1, %v408_v23  ;;  %vm367_vm15 = vweird.f32 %v871_v24 }
  0xa2   :  { %v97_v14 = vpop.xlane.xlu0 %96  ;;  %v346_v55 = vmul.f32 %v847_v11, %v345_v56  ;;  %v372_v16 = vmul.f32 %v924_v58, %v860_v62  ;;  %v953_v8 = vpop.eup %582  ;;  %v414_v15 = vmax.f32 %v393_v49, %v394_v5  ;;  %v280_v1 = vsel %vm279_vm2, %v741_v4, %v864_v21  ;;  %v469_v21 = vld [vmem:[%s1121_s2 + $0x30] sm:$0xff] }
  0xa3   :  { %v974_v10 = vpop.eup %584  ;;  %v336_v12 = vmul.f32 %v873_v25, %v335_v43  ;;  %v362_v22 = vmul.f32 %v953_v8, %v871_v24  ;;  %v982_v0 = vadd.f32 1e-12, %v97_v14  ;;  %vm368_vm1 = vweird.f32 %v953_v8 }
  0xa4   :  { %v350_v37 = vsel %vm964_vm10, %v847_v11, %v346_v55  ;;  %v352_v32 = vmul.f32 %v974_v10, %v877_v26  ;;  %v473_v11 = vld [vmem:[%s1121_s2 + $0x50] sm:$0xff]  ;;  %v373_v35 = vmul.f32 %v924_v58, %v372_v16  ;;  %v415_v41 = vrot.slane %v414_v15, 4  ;;  %vm1034_vm5 = vmor %vm367_vm15, %vm368_vm1 }
  0xa5   :  { %v340_v34 = vsel %vm339_vm11, %v873_v25, %v336_v12  ;;  %v363_v42 = vmul.f32 %v953_v8, %v362_v22  ;;  %v402_v38 = vmul.f32 %v350_v37, %v824_v61  ;;  %586 = vrsqrt.f32 %v982_v0  ;;  %511 = vmatpush.msra.mxu1 %v473_v11 }
  0xa6   :  { %v206_v36 = vpop.f32.mrf.mxu3  ;;  %v401_v60 = vmul.f32 %v340_v34, %v774_v28  ;;  %v353_v39 = vmul.f32 %v974_v10, %v352_v32  ;;  %v1006_v25 = vpop.f32.mrf.mxu2  ;;  %v428_v61 = vmax.f32 %v397_v30, %v398_v18  ;;  %v374_v52 = vmul.f32 0.5, %v373_v35 }
  0xa7   :  { %v364_v45 = vmul.f32 0.5, %v363_v42  ;;  %v179_v49 = vpop.f32.mrf.mxu0  ;;  %vm358_vm0 = vweird.f32 %v974_v10  ;;  %512 = vmatpush.msra.mxu1 %v472_v44  ;;  %v416_v63 = vmax.f32 %v414_v15, %v415_v41  ;;  %vm357_vm3 = vweird.f32 %v877_v26  ;;  %v468_v15 = vld [vmem:[%s1121_s2 + $0x28] sm:$0xff]  ;;  %v465_v41 = vld [vmem:[%s1121_s2 + $0x10] sm:$0xff] }
  0xa8   :  { %v354_v28 = vmul.f32 0.5, %v353_v39  ;;  %v442_v54 = vmax.f32 %v401_v60, %v402_v38  ;;  %v395_v5 = vmul.f32 %v280_v1, %v179_v49  ;;  %v325_v14 = vsub.f32 1.5, %v324_v27  ;;  %vm359_vm8 = vmor %vm357_vm3, %vm358_vm0 }
  0xa9   :  { %v365_v53 = vsub.f32 1.5, %v364_v45  ;;  %513 = vmatpush.msra.mxu1 %v471_v50  ;;  %v429_v57 = vrot.slane %v428_v61, 4  ;;  %v316_v43 = vmul.f32 %v814_v51, %v315_v29  ;;  %v375_v55 = vsub.f32 1.5, %v374_v52 }
  0xaa   :  { %v355_v56 = vsub.f32 1.5, %v354_v28  ;;  %vm377_vm6 = vweird.f32 %v860_v62  ;;  %v421_v16 = vmax.f32 %v395_v5, %v396_v33  ;;  %v443_v9 = vrot.slane %v442_v54, 4 }
  0xab   :  { %v366_v17 = vmul.f32 %v953_v8, %v365_v53  ;;  %v1041_v26 = vpop.eup %586  ;;  %514 = vmatpush.msra.mxu1 %v470_v3  ;;  %v417_v7 = vrot.slane %v416_v63, 2  ;;  %v326_v13 = vmul.f32 %v879_v31, %v325_v14  ;;  %v410_v37 = vrot.slane %v1008_v48, 2  ;;  %v463_v53 = vld [vmem:[%s1121_s2] sm:$0xff] }
  0xac   :  { %v356_v2 = vmul.f32 %v974_v10, %v355_v56  ;;  %v382_v19 = vmul.f32 %v1041_v26, %v982_v0  ;;  %v422_v12 = vrot.slane %v421_v16, 4  ;;  %v430_v22 = vmax.f32 %v428_v61, %v429_v57 }
  0xad   :  { %v370_v24 = vsel %vm1034_vm5, %v953_v8, %v366_v17  ;;  %515 = vmatpush.msra.mxu1 %v469_v21  ;;  %vm327_vm7 = vweird.f32 %v803_v46  ;;  %vm328_vm12 = vweird.f32 %v879_v31  ;;  %v444_v11 = vmax.f32 %v442_v54, %v443_v9  ;;  %v466_v46 = vld [vmem:[%s1121_s2 + $0x18] sm:$0xff] }
  0xae   :  { %v1049_v6 = vpop.f32.mrf.mxu3  ;;  %v360_v59 = vsel %vm359_vm8, %v974_v10, %v356_v2  ;;  %v404_v10 = vmul.f32 %v370_v24, %v206_v36  ;;  %v383_v23 = vmul.f32 %v1041_v26, %v382_v19  ;;  %v423_v32 = vmax.f32 %v421_v16, %v422_v12  ;;  %v194_v18 = vpop.f32.mrf.mxu2  ;;  %vm329_vm14 = vmor %vm327_vm7, %vm328_vm12 }
  0xaf   :  { %v403_v40 = vmul.f32 %v360_v59, %v899_v47  ;;  %v320_v47 = vsel %vm1063_vm9, %v814_v51, %v316_v43  ;;  %516 = vmatpush.msra.mxu1 %v468_v15  ;;  %v418_v33 = vmax.f32 %v416_v63, %v417_v7  ;;  %v376_v34 = vmul.f32 %v924_v58, %v375_v55 }
  0xb0   :  { %vm378_vm10 = vweird.f32 %v924_v58  ;;  %v384_v51 = vmul.f32 0.5, %v383_v23  ;;  %v424_v42 = vrot.slane %v423_v32, 2  ;;  %v330_v36 = vsel %vm329_vm14, %v879_v31, %v326_v13 }
  0xb1   :  { %v449_v30 = vmax.f32 %v403_v40, %v404_v10  ;;  %517 = vmatpush.msra.mxu1 %v467_v20  ;;  %v411_v60 = vmax.f32 %v1008_v48, %v410_v37  ;;  %v399_v38 = vmul.f32 %v320_v47, %v1006_v25  ;;  %v400_v39 = vmul.f32 %v330_v36, %v194_v18  ;;  %vm1094_vm15 = vmor %vm377_vm6, %vm378_vm10  ;;  %v464_v48 = vld [vmem:[%s1121_s2 + $0x8] sm:$0xff]  ;;  %v555_v18 = vld [vmem:[%s1120_s3] ss:$0 sm:$0xff] }
  0xb2   :  { %v431_v44 = vrot.slane %v430_v22, 2  ;;  %v385_v27 = vsub.f32 1.5, %v384_v51  ;;  %v425_v45 = vmax.f32 %v423_v32, %v424_v42  ;;  %vm388_vm11 = vweird.f32 %v1041_v26 }
  0xb3   :  { %v450_v35 = vrot.slane %v449_v30, 4  ;;  %518 = vmatpush.msra.mxu1 %v466_v46  ;;  %v445_v29 = vrot.slane %v444_v11, 2  ;;  %vm387_vm13 = vweird.f32 %v982_v0  ;;  %v435_v31 = vmax.f32 %v399_v38, %v400_v39 }
  0xb4   :  { %v419_v28 = vrot.slane %v418_v33, 1  ;;  %v380_v49 = vsel %vm1094_vm15, %v924_v58, %v376_v34  ;;  %v386_v50 = vmul.f32 %v1041_v26, %v385_v27  ;;  %v426_v52 = vrot.slane %v425_v45, 1  ;;  %vm389_vm0 = vmor %vm387_vm13, %vm388_vm11 }
  0xb5   :  { %v451_v61 = vmax.f32 %v449_v30, %v450_v35  ;;  %519 = vmatpush.msra.mxu1 %v465_v41  ;;  %v436_v62 = vrot.slane %v435_v31, 4  ;;  %v412_v54 = vrot.slane %v411_v60, 1  ;;  %v432_v56 = vmax.f32 %v430_v22, %v431_v44 }
  0xb6   :  { %v212_v0 = vpop.f32.mrf.mxu3  ;;  %v390_v63 = vsel %vm389_vm0, %v1041_v26, %v386_v50  ;;  %v405_v58 = vmul.f32 %v380_v49, %v1049_v6  ;;  %v446_v17 = vmax.f32 %v444_v11, %v445_v29  ;;  %v420_v5 = vmax.f32 %v418_v33, %v419_v28 }
  0xb7   :  { %520 = vmatpush.msra.mxu1 %v464_v48  ;;  %v437_v1 = vmax.f32 %v435_v31, %v436_v62  ;;  %v406_v3 = vmul.f32 %v390_v63, %v212_v0  ;;  %v452_v14 = vrot.slane %v451_v61, 2  ;;  %vm491_vm1 = vcmask 1041409  }
  0xb8   :  { %v427_v57 = vmax.f32 %v425_v45, %v426_v52  ;;  %v413_v4 = vmax.f32 %v411_v60, %v412_v54  ;;  %v433_v21 = vrot.slane %v432_v56, 1  ;;  %vm493_vm2 = vcmask 1042434  }
  0xb9   :  { %521 = vmatpush.msra.mxu1 %v463_v53  ;;  %v438_v2 = vrot.slane %v437_v1, 2  ;;  %v456_v43 = vmax.f32 %v405_v58, %v406_v3  ;;  %v447_v16 = vrot.slane %v446_v17, 1  ;;  %v453_v9 = vmax.f32 %v451_v61, %v452_v14 }
  0xba   :  { %v492_v26 = vsel %vm491_vm1, %v420_v5, %v413_v4  ;;  %vm495_vm3 = vcmask 1043459   ;;  %v434_v13 = vmax.f32 %v432_v56, %v433_v21  ;;  %vm497_vm4 = vcmask 1044484  }
  0xbb   :  { %v439_v55 = vmax.f32 %v437_v1, %v438_v2  ;;  %v457_v24 = vrot.slane %v456_v43, 4  ;;  %v494_v6 = vsel %vm493_vm2, %v427_v57, %v492_v26  ;;  %v454_v19 = vrot.slane %v453_v9, 1 }
  0xbc   :  { %v496_v8 = vsel %vm495_vm3, %v434_v13, %v494_v6  ;;  %vm499_vm5 = vcmask 1045509   ;;  %v448_v10 = vmax.f32 %v446_v17, %v447_v16  ;;  %vm501_vm6 = vcmask 1046534  }
  0xbd   :  { %v440_v59 = vrot.slane %v439_v55, 1  ;;  %v458_v7 = vmax.f32 %v456_v43, %v457_v24  ;;  %v455_v20 = vmax.f32 %v453_v9, %v454_v19  ;;  %vm503_vm8 = vcmask 1047559  }
  0xbf   :  { %v441_v15 = vmax.f32 %v439_v55, %v440_v59  ;;  %v459_v40 = vrot.slane %v458_v7, 2 }
  0xc1   :  { %v460_v12 = vmax.f32 %v458_v7, %v459_v40  ;;  %v498_v37 = vsel %vm497_vm4, %v441_v15, %v496_v8 }
  0xc2   :  { %v500_v47 = vsel %vm499_vm5, %v448_v10, %v498_v37 }
  0xc3   :  { %v461_v22 = vrot.slane %v460_v12, 1  ;;  %v502_v30 = vsel %vm501_vm6, %v455_v20, %v500_v47 }
  0xc5   :  { %v462_v23 = vmax.f32 %v460_v12, %v461_v22 }
  0xc7   :  { %v504_v32 = vsel %vm503_vm8, %v462_v23, %v502_v30 }
  0xc8   :  { %522 = vmatmul.f32.vlgmr.msra.gmra.mxu1 %v504_v32 }
 0x145   :  { %v523_v11 = vpop.f32.mrf.mxu1 }
 0x146   :  { %v524_v33 = vadd.f32 %v555_v18, %v523_v11 }
 0x148   :  { %526 = vst [vmem:[%s1122_s4] sm:$0xff] %v524_v33 }

</bundles_post_ra>
